<compile_context>
chip_gen: v7x
topology: tpu7x:2x2x1
jax: 0.10.0
libtpu: 0.0.40
codegen_flags: <defaults>
</compile_context>

<pallas_src>
import jax
import jax.numpy as jnp
from jax import lax
from jax.experimental import pallas as pl
from jax.experimental.pallas import tpu as pltpu

BN_EPS = 1e-5


def _gpg_kernel(proto_ref, cat_ref, w1_ref, b1_ref, w2_ref, b2_ref, out_ref):
    # ---- conv1[0] + BatchNorm (folded): (K, Cin) @ (Cin, Cout) + b1' ----
    h = jnp.dot(proto_ref[...], w1_ref[...],
                preferred_element_type=jnp.float32) + b1_ref[...]

    # ---- ReLU ----
    h = jnp.maximum(h, 0.0)

    # ---- conv1[3]: 1x1 conv == linear ----
    proto = jnp.dot(h, w2_ref[...],
                    preferred_element_type=jnp.float32) + b2_ref[...]   # (K, Cout)

    # ---- softmax(category, dim=1) ----
    cat = cat_ref[...]                                                  # (B, K)
    m = jnp.max(cat, axis=1, keepdims=True)
    e = jnp.exp(cat - m)
    sm = e / jnp.sum(e, axis=1, keepdims=True)

    # ---- per-class weights: background (k==0) gets 1, foreground gets softmax ----
    B, K = cat.shape
    Cout = proto.shape[1]
    k_idx = lax.broadcasted_iota(jnp.int32, (B, K), 1)
    w = jnp.where(k_idx == 0, 1.0, sm)                                  # (B, K)

    # ---- lane-dense store: (B, K*Cout) slab; wrapper reshapes to (B, K, Cout) ----
    out_ref[...] = (w[:, :, None] * proto[None, :, :]).reshape(B, K * Cout)


def global_prototypes_generator(prototypes, category, params):
    """prototypes: (K, Cin) f32, category: (B, K) f32 -> (B, K, Cout) f32."""
    K, Cin = prototypes.shape
    B, K2 = category.shape
    assert K == K2
    Cout = params["w1"].shape[1]

    # Fold inference-mode BatchNorm into the first conv (pure param folding).
    # TODO(synk): PyTorch default is train-mode BN (batch stats over K); we use
    # eval-mode semantics with deterministic running stats.
    inv_std = lax.rsqrt(params["var"] + BN_EPS)                # (1, Cout)
    scale = params["gamma"] * inv_std                          # (1, Cout)
    w1_folded = params["w1"] * scale                           # (Cin, Cout)
    b1_folded = (params["b1"] - params["mean"]) * scale + params["beta"]

    vmem = lambda: pl.BlockSpec(memory_space=pltpu.MemorySpace.VMEM)

    out2d = pl.pallas_call(
        _gpg_kernel,
        out_shape=jax.ShapeDtypeStruct((B, K * Cout), jnp.float32),
        in_specs=[vmem() for _ in range(6)],
        out_specs=vmem(),
    )(prototypes, category, w1_folded, b1_folded, params["w2"], params["b2"])

    return out2d.reshape(B, K, Cout)


def reference_forward(prototypes, category, params):
    """Pure-JAX reference mirroring the PyTorch forward (eval-mode BN)."""
    h = prototypes @ params["w1"] + params["b1"]
    h = (h - params["mean"]) / jnp.sqrt(params["var"] + BN_EPS) * params["gamma"] + params["beta"]
    h = jnp.maximum(h, 0.0)
    proto = h @ params["w2"] + params["b2"]                     # (K, Cout)
    sm = jax.nn.softmax(category, axis=1)                       # (B, K)
    B = category.shape[0]
    bg = jnp.broadcast_to(proto[0][None, None, :], (B, 1, proto.shape[1]))
    fg = sm[:, 1:, None] * proto[1:][None, :, :]
    return jnp.concatenate([bg, fg], axis=1)


def init_params(key, in_channels, out_channels):
    ks = jax.random.split(key, 6)
    return {
        "w1": 0.05 * jax.random.normal(ks[0], (in_channels, out_channels), jnp.float32),
        "b1": 0.01 * jax.random.normal(ks[1], (1, out_channels), jnp.float32),
        "gamma": 1.0 + 0.1 * jax.random.normal(ks[2], (1, out_channels), jnp.float32),
        "beta": 0.05 * jax.random.normal(ks[3], (1, out_channels), jnp.float32),
        "mean": 0.02 * jax.random.normal(ks[4], (1, out_channels), jnp.float32),
        "var": jnp.full((1, out_channels), 1.0, jnp.float32),
        "w2": 0.05 * jax.random.normal(ks[5], (out_channels, out_channels), jnp.float32),
        "b2": jnp.zeros((1, out_channels), jnp.float32),
    }


if __name__ == "__main__":
    # Small shapes consistent with the module's forward.
    in_channels = 32
    out_channels = 16
    classes_num = 5
    batch = 2

    key = jax.random.PRNGKey(0)
    k_proto, k_cat, k_params = jax.random.split(key, 3)

    prototypes = jax.random.normal(k_proto, (classes_num, in_channels), jnp.float32)
    category = jax.random.normal(k_cat, (batch, classes_num), jnp.float32)
    params = init_params(k_params, in_channels, out_channels)

    out = global_prototypes_generator(prototypes, category, params)
    out = jax.block_until_ready(out)

    ref = reference_forward(prototypes, category, params)
    assert out.shape == (batch, classes_num, out_channels)
    assert jnp.allclose(out, ref, atol=1e-5, rtol=1e-5), (
        f"max abs err = {jnp.max(jnp.abs(out - ref))}")

    print("KERNEL_OK")
</pallas_src>

<mosaic_0001>
module attributes {stable_mosaic.version = 11 : i64} {
  func.func @_gpg_kernel(%arg0: memref<5x32xf32, #tpu.memory_space<vmem>>, %arg1: memref<2x5xf32, #tpu.memory_space<vmem>>, %arg2: memref<32x16xf32, #tpu.memory_space<vmem>>, %arg3: memref<1x16xf32, #tpu.memory_space<vmem>>, %arg4: memref<16x16xf32, #tpu.memory_space<vmem>>, %arg5: memref<1x16xf32, #tpu.memory_space<vmem>>, %arg6: memref<2x80xf32, #tpu.memory_space<vmem>>) attributes {dimension_semantics = [], scalar_prefetch = 0 : i64, scratch_operands = 0 : i64, tpu.core_type = #tpu.core_type<tc>} {
    %c0 = arith.constant 0 : index
    %c0_0 = arith.constant 0 : index
    %0 = vector.load %arg0[%c0, %c0_0] : memref<5x32xf32, #tpu.memory_space<vmem>>, vector<5x32xf32>
    %c0_1 = arith.constant 0 : index
    %c0_2 = arith.constant 0 : index
    %1 = vector.load %arg2[%c0_1, %c0_2] : memref<32x16xf32, #tpu.memory_space<vmem>>, vector<32x16xf32>
    %cst = arith.constant dense<0.000000e+00> : vector<5x16xf32>
    %2 = tpu.matmul %0, %1, %cst {dimension_numbers = #tpu.dot_dimension_numbers<[1], [0], [0], [1], [0, 0, 1, 1], [], []>} : vector<5x32xf32>, vector<32x16xf32>, vector<5x16xf32> -> vector<5x16xf32>
    %c0_3 = arith.constant 0 : index
    %c0_4 = arith.constant 0 : index
    %3 = vector.load %arg3[%c0_3, %c0_4] : memref<1x16xf32, #tpu.memory_space<vmem>>, vector<1x16xf32>
    %4 = vector.broadcast %3 : vector<1x16xf32> to vector<5x16xf32>
    %5 = arith.addf %2, %4 : vector<5x16xf32>
    %cst_5 = arith.constant 0.000000e+00 : f32
    %6 = vector.broadcast %cst_5 : f32 to vector<5x16xf32>
    %7 = arith.maximumf %5, %6 : vector<5x16xf32>
    %c0_6 = arith.constant 0 : index
    %c0_7 = arith.constant 0 : index
    %8 = vector.load %arg4[%c0_6, %c0_7] : memref<16x16xf32, #tpu.memory_space<vmem>>, vector<16x16xf32>
    %cst_8 = arith.constant dense<0.000000e+00> : vector<5x16xf32>
    %9 = tpu.matmul %7, %8, %cst_8 {dimension_numbers = #tpu.dot_dimension_numbers<[1], [0], [0], [1], [0, 0, 1, 1], [], []>} : vector<5x16xf32>, vector<16x16xf32>, vector<5x16xf32> -> vector<5x16xf32>
    %c0_9 = arith.constant 0 : index
    %c0_10 = arith.constant 0 : index
    %10 = vector.load %arg5[%c0_9, %c0_10] : memref<1x16xf32, #tpu.memory_space<vmem>>, vector<1x16xf32>
    %11 = vector.broadcast %10 : vector<1x16xf32> to vector<5x16xf32>
    %12 = arith.addf %9, %11 : vector<5x16xf32>
    %c0_11 = arith.constant 0 : index
    %c0_12 = arith.constant 0 : index
    %13 = vector.load %arg1[%c0_11, %c0_12] : memref<2x5xf32, #tpu.memory_space<vmem>>, vector<2x5xf32>
    %cst_13 = arith.constant dense<0xFF800000> : vector<2xf32>
    %14 = vector.multi_reduction <maximumf>, %13, %cst_13 [1] : vector<2x5xf32> to vector<2xf32>
    %15 = vector.shape_cast %14 : vector<2xf32> to vector<2x1xf32>
    %16 = vector.broadcast %15 : vector<2x1xf32> to vector<2x5xf32>
    %17 = arith.subf %13, %16 : vector<2x5xf32>
    %18 = math.exp %17 : vector<2x5xf32>
    %cst_14 = arith.constant dense<0.000000e+00> : vector<2xf32>
    %19 = vector.multi_reduction <add>, %18, %cst_14 [1] : vector<2x5xf32> to vector<2xf32>
    %20 = vector.shape_cast %19 : vector<2xf32> to vector<2x1xf32>
    %21 = vector.broadcast %20 : vector<2x1xf32> to vector<2x5xf32>
    %22 = arith.divf %18, %21 : vector<2x5xf32>
    %23 = tpu.iota {dimensions = array<i32: 1>} : vector<2x5xi32>
    %c0_i32 = arith.constant 0 : i32
    %24 = vector.broadcast %c0_i32 : i32 to vector<2x5xi32>
    %25 = arith.cmpi eq, %23, %24 : vector<2x5xi32>
    %cst_15 = arith.constant 1.000000e+00 : f32
    %26 = vector.broadcast %cst_15 : f32 to vector<2x5xf32>
    %27 = arith.select %25, %26, %22 : vector<2x5xi1>, vector<2x5xf32>
    %28 = vector.shape_cast %27 : vector<2x5xf32> to vector<2x5x1xf32>
    %29 = vector.shape_cast %12 : vector<5x16xf32> to vector<1x5x16xf32>
    %30 = vector.broadcast %28 : vector<2x5x1xf32> to vector<2x5x16xf32>
    %31 = vector.broadcast %29 : vector<1x5x16xf32> to vector<2x5x16xf32>
    %32 = arith.mulf %30, %31 : vector<2x5x16xf32>
    %33 = vector.shape_cast %32 : vector<2x5x16xf32> to vector<2x80xf32>
    %c0_16 = arith.constant 0 : index
    %c0_17 = arith.constant 0 : index
    %34 = vector.load %arg6[%c0_16, %c0_17] : memref<2x80xf32, #tpu.memory_space<vmem>>, vector<2x80xf32>
    tpu.vector_store %arg6[%c0_16, %c0_17], %33 {strides = array<i32>} : memref<2x80xf32, #tpu.memory_space<vmem>>, vector<2x80xf32>,
    return
  }
}

</mosaic_0001>

<bundles_post_ra>
// kernel: tpu_custom_call.1
= control target key start
LH: loop header
LB: loop body
LE: loop exit
PB: predicated region body
PF: predicated region fallthrough
CT: control target
= control target key end

     0   :  { %vm195_vm0 = vcmask 33792   ;;  %v385_v4 = vmov 0.0|0.0   ;;  %vm386_vm1 = vmmov 0   ;;  %v387_v8 = vmov 0.0   ;;  %s482_s0 = inlined_call_operand.vmem [shape: f32[5,32], index: 0, kind: input, shape index: {}]   ;;  %s483_s1 = inlined_call_operand.vmem [shape: f32[2,5], index: 1, kind: input, shape index: {}]   ;;  %s484_s2 = inlined_call_operand.vmem [shape: f32[32,16], index: 2, kind: input, shape index: {}]   ;;  %s485_s3 = inlined_call_operand.vmem [shape: f32[1,16], index: 3, kind: input, shape index: {}]   ;;  %s486_s4 = inlined_call_operand.vmem [shape: f32[16,16], index: 4, kind: input, shape index: {}]   ;;  %s487_s5 = inlined_call_operand.vmem [shape: f32[1,16], index: 5, kind: input, shape index: {}]   ;;  %s488_s6 = inlined_call_operand.hbm [shape: f32[2,80], index: 6, kind: output, shape index: {}]  }
   0x1   :  { %v194_v0 = vld [vmem:[%s483_s1] sm:$0x3]  ;;  %v26_v2 = vld [vmem:[%s484_s2 + $0x8] sm:$0xff]  ;;  %338 = vmatprep.subr.bf16.mxu0 %v385_v4  ;;  %v27_v6 = vld [vmem:[%s484_s2 + $0x10] sm:$0xff]  ;;  %344 = vmatprep.subr.bf16.mxu1 %v385_v4 }
   0x2   :  { %v25_v1 = vld [vmem:[%s484_s2] sm:$0xff]  ;;  %v196_v3 = vsel %vm195_vm0, %v194_v0, -inf  ;;  %v28_v7 = vld [vmem:[%s484_s2 + $0x18] sm:$0xff]  ;;  %328 = vmatprep.mubr.msk.f32.mxu0 %vm386_vm1, %v387_v8 }
   0x3   :  { %v339_v5 = vpack.c.bf16 %v26_v2, %v25_v1  ;;  %197 = vmax.xlane.f32.xlu0 %v196_v3 }
   0x4   :  { %11 = vsyncpa [#allocation3], 0  ;;  %v342_v9 = vpack.c.bf16 %v28_v7, %v27_v6  ;;  %335 = vmatprep.mubr.msk.f32.mxu1 %vm386_vm1, %v387_v8  ;;  %v24_v10 = vld [vmem:[%s482_s0] sm:$0x1f]  ;;  %vm36_vm2 = vcmask 261120   ;;  %v112_v12 = vld [vmem:[%s486_s4 + $0x8] sm:$0xff]  ;;  %v207_v25 = vlaneseq }
   0x5   :  { %340 = vmatpush3.bf16.msra.mxu0 %v339_v5  ;;  %v111_v11 = vld [vmem:[%s486_s4] sm:$0xff]  ;;  %vm120_vm3 = vcmask 130048   ;;  %v388_v35 = vmov 1983009808   ;;  %v389_v40 = vmov 1934713408  }
   0x6   :  { %341 = vmatprep.subr.bf16.mxu0 %v385_v4  ;;  %v345_v13 = vpack.c.bf16 %v112_v12, %v111_v11  ;;  %v307_v19 = vld [vmem:[%s485_s3] ss:$0 sm:$0xff]  ;;  %v208_v26 = vand.u32 127, %v207_v25  ;;  %v212_v27 = vshrl.u32 %v207_v25, 7  ;;  %v228_v36 = vunpack.c.l.s4 %v388_v35  ;;  %s390_s12 = smov 32   ;;  %s392_s13 = smov 48  }
   0x7   :  { %v309_v39 = vld [vmem:[%s487_s5] ss:$0 sm:$0xff]  ;;  %v246_v41 = vunpack.c.l.s4 %v389_v40  ;;  %s391_s5 = smov 16   ;;  %s393_s14 = smov 64   ;;  %vm287_vm5 = vcmask 392192   ;;  %vm289_vm6 = vcmask 523264  }
   0x8   :  { %346 = vmatpush3.bf16.msra.mxu1 %v345_v13  ;;  %vm209_vm4 = vcmp.eq.s32.totalorder %v208_v26, 0  ;;  %v213_v29 = vsub.s32 0, %v212_v27  ;;  %v220_v33 = vsub.s32 1, %v212_v27  ;;  %v229_v38 = vunpack.c.0.s8 %v228_v36  ;;  %s394_s15 = smov [#allocation2]  }
   0x9   :  { %343 = vmatpush3.bf16.msra.mxu0 %v342_v9  ;;  %v247_v49 = vunpack.c.0.s8 %v246_v41  ;;  %s299_s16 = sshll.u32 %s394_s15, 4  ;;  %vm291_vm7 = vcmask 648192   ;;  %s300_s16 = int_to_ptr.vmem [resolvable:$true] %s299_s16 }
   0xa   :  { %v232_v44 = vsub.s32 %v229_v38, %v212_v27  ;;  %s361_s17 = scalar_lea.vmem %s300_s16, 32  ;;  %p366_p1 = scmp.lt.s32.totalorder %s300_s16, %s300_s16 }
   0xb   :  { %v250_v54 = vsub.s32 %v247_v49, %v212_v27  ;;  %p362_p0 = scmp.ne.s32.totalorder %s300_s16, %s361_s17  ;;  %p367_p2 = scmp.lt.s32.totalorder %s361_s17, %s361_s17 }
   0xc   :  { %329 = vmatmul.mubr.msk.f32.vlgmr.msra.gmra.mrb[0].mxu0 %vm36_vm2, %v24_v10 }
   0xd   :  { %p368_p3 = por %p367_p2, %p366_p1 }
   0xf   :  { %p369_p4 = pnand %p368_p3, %p362_p0 }
  0x90   :  { %v198_v14 = vpop.xlane.xlu0 %197 }
  0x91   :  { %v199_v15 = vsub.f32 %v194_v0, %v198_v14 }
  0x93   :  { %v200_v16 = vmul.f32 1.442695, %v199_v15 }
  0x95   :  { %357 = vpow2.f32 %v200_v16 }
  0x9f   :  { %v358_v17 = vpop.eup %357 }
  0xa0   :  { %v202_v18 = vsel %vm195_vm0, %v358_v17, 0.0 }
  0xa1   :  { %203 = vadd.xlane.f32.xlu0 %v202_v18 }
  0xdf   :  { %v106_v20 = vpop.f32.mrb[0].mxu0 }
  0xe0   :  { %v107_v21 = vadd.f32 %v307_v19, %v106_v20  ;;  %v330_v22 = vpop.f32.mrb[1].mxu0 }
  0xe2   :  { %v110_v23 = vmax.f32 %v107_v21, 0.0 }
  0xe4   :  { %336 = vmatmul.mubr.msk.f32.vlgmr.msra.gmra.mrb[0].mxu1 %vm120_vm3, %v110_v23 }
 0x12e   :  { %v204_v24 = vpop.xlane.xlu0 %203 }
 0x12f   :  { %359 = vrcp.f32 %v204_v24 }
 0x139   :  { %v360_v28 = vpop.eup %359 }
 0x13a   :  { %v206_v30 = vmul.f32 %v360_v28, %v358_v17 }
 0x13c   :  { %v210_v31 = vsel %vm209_vm4, 1.0, %v206_v30 }
 0x13d   :  { %v214_v32 = vrot.slane %v210_v31, %v213_v29  ;;  %v221_v34 = vrot.slane %v210_v31, %v220_v33 }
 0x13f   :  { %216 = vbcast.lane.b32.xlu1 %v214_v32, 256 }
 0x143   :  { %223 = vbcast.lane.b32.xlu1 %v221_v34, 256 }
 0x1b1   :  { %v217_v37 = vpop.permute.xlu1 %216 }
 0x1b5   :  { %v224_v46 = vpop.permute.xlu1 %223 }
 0x1b7   :  { %v190_v42 = vpop.f32.mrb[0].mxu1 }
 0x1b8   :  { %v191_v43 = vadd.f32 %v309_v39, %v190_v42  ;;  %v337_v45 = vpop.f32.mrb[1].mxu1 }
 0x1ba   :  { %v225_v47 = vmul.f32 %v217_v37, %v191_v43  ;;  %v226_v48 = vmul.f32 %v224_v46, %v191_v43 }
 0x1bc   :  { %v233_v50 = vrot.slane %v225_v47, %v232_v44  ;;  %v241_v51 = vrot.slane %v226_v48, %v232_v44  ;;  %v311_v58 = vcombine.high %v225_v47, %v226_v48 }
 0x1be   :  { %v243_v52 = vcombine.low %v233_v50, %v241_v51  ;;  %v244_v53 = vcombine.high %v233_v50, %v241_v51  ;;  %v268_v60 = vrot.slane %v311_v58, %v250_v54 }
 0x1c0   :  { %v258_v55 = vrot.slane %v244_v53, %v250_v54  ;;  %v251_v56 = vrot.slane %v243_v52, %v250_v54 }
 0x1c2   :  { %274 = vrot.lane.b32.xlu1 %v258_v55, %s390_s12  ;;  %v260_v57 = vcombine.high %v251_v56, %v387_v8  ;;  %v261_v59 = vcombine.high %v258_v55, %v387_v8 }
 0x1c4   :  { %270 = vrot.lane.b32.xlu0 %v260_v57, %s391_s5 }
 0x1c6   :  { %278 = vrot.lane.b32.xlu1 %v261_v59, %s392_s13 }
 0x1ca   :  { %282 = vrot.lane.b32.xlu1 %v268_v60, %s393_s14 }
 0x234   :  { %v275_v61 = vpop.permute.xlu1 %274 }
 0x236   :  { %v271_v62 = vpop.permute.xlu0 %270 }
 0x237   :  { %v285_v63 = vsel %vm120_vm3, %v251_v56, %v271_v62 }
 0x238   :  { %v279_v0 = vpop.permute.xlu1 %278  ;;  %v286_v1 = vsel %vm36_vm2, %v285_v63, %v275_v61 }
 0x239   :  { %v288_v2 = vsel %vm287_vm5, %v286_v1, %v279_v0 }
 0x23c   :  { %v283_v3 = vpop.permute.xlu1 %282 }
 0x23d   :  { %v290_v4 = vsel %vm289_vm6, %v288_v2, %v283_v3 }
 0x23e   :  { %292 = vst.msk [vmem:[#allocation2] sm:$0x3] %vm291_vm7, %v290_v4 }
 0x23f   :  { %372 = shalt.err (!%p369_p4)
}
 0x240   :  { %s373_s20 = scalar_lea.hbm %s488_s6, 32 }
 0x241   :  { %p374_p5 = scmp.ne.s32.totalorder %s488_s6, %s373_s20  ;;  %p377_p6 = scmp.lt.u32.totalorder %s373_s20, %s488_s6 }
 0x243   :  { %p379_p7 = pnand %p377_p6, %p374_p5 }
 0x245   :  { %382 = shalt.err (!%p379_p7)
}
 0x246   :  { %302 = dma.vmem_to_hbm [thread:$0]  %s300_s16, 32, %s488_s6, [#allocation3]  }
 0x247   :  { %383 = dma.done.wait [#allocation3], 32  }
 0x248   :  { %384 = vsyncadd [#allocation3], 4294967264 }
 0x249   :  { %306 = vsyncpa [#allocation3], 1 }

</bundles_post_ra>
